<compile_context>
chip_gen: v7x
topology: tpu7x:2x2x1
jax: 0.10.0
libtpu: 0.0.40
codegen_flags: <defaults>
</compile_context>

<pallas_src>
import math

import jax
import jax.numpy as jnp
from jax.experimental import pallas as pl
from jax.experimental.pallas import tpu as pltpu


def _round_up(v, m):
    return ((v + m - 1) // m) * m


# ---------------------------------------------------------------------------
# Fused GCN kernel:  out[i] = sum_k adj[i, k] @ (x[k] @ W)
# Grid = (i = output-row tile, k = node / adj-column tile); k is the reduction
# axis (last, 'arbitrary'), i is 'parallel' (megacore-shardable on v7x).
# ---------------------------------------------------------------------------
def _gcn_fused_kernel(x_ref, adj_ref, w_ref, o_ref, acc_ref):
    k = pl.program_id(1)

    @pl.when(k == 0)
    def _():
        acc_ref[...] = jnp.zeros_like(acc_ref)

    # support tile (tk, out_p) = x[k] @ W.  Recomputed once per (i, k) step;
    # the extra MXU work is free in the HBM-bound regime and saves the HBM
    # round trip of the support matrix.
    support = jnp.dot(x_ref[...], w_ref[...], preferred_element_type=jnp.float32)

    # adj tile (tm, tk) @ support (tk, out_p), accumulate in f32.
    acc_ref[...] += jnp.dot(
        adj_ref[...],
        support.astype(adj_ref.dtype),
        preferred_element_type=jnp.float32,
    )

    @pl.when(k == pl.num_programs(1) - 1)
    def _():
        o_ref[...] = acc_ref[...].astype(o_ref.dtype)


def graph_convolution(x, adj, weight, *, tm=512, tk=512,
                      compute_dtype=jnp.bfloat16, out_dtype=None):
    """Pallas implementation of GraphConvolution.forward(input, adj).

    output = adj @ (x @ weight), computed in one fused, tiled kernel.
    Inputs are cast to `compute_dtype` (bf16 by default) for MXU/DMA
    efficiency; accumulation is always f32; output dtype defaults to x.dtype.
    """
    N, in_features = x.shape
    in_features2, out_features = weight.shape
    assert in_features == in_features2, "weight must be (in_features, out_features)"
    assert adj.shape == (N, N), "adj must be (N, N)"
    out_dtype = out_dtype or x.dtype

    # --- padded feature dims (lane-dense outputs, aligned contractions) -----
    in_p = _round_up(in_features, 128)
    out_p = _round_up(out_features, 128)

    # --- row / node tiling ---------------------------------------------------
    n128 = _round_up(N, 128)
    tm_eff = min(tm, n128)
    # Ensure the 'parallel' row axis has >=2 steps when there is anything to
    # split, so both v7x TensorCores are fed (no cost on v5e/v6e).
    if n128 >= 256 and tm_eff >= n128:
        tm_eff = max(128, _round_up(n128 // 2, 128))
    tk_eff = min(tk, n128)

    grid_i = pl.cdiv(N, tm_eff)
    grid_k = pl.cdiv(N, tk_eff)
    M_p = grid_i * tm_eff          # padded output-row / adj-row extent
    K_p = grid_k * tk_eff          # padded node / adj-column extent

    # --- cast + zero-pad (zero padding is exact: padded rows/cols contribute
    #     nothing to the valid region, which is sliced out at the end) --------
    cdt = jnp.dtype(compute_dtype)
    x_pd = jnp.pad(x.astype(compute_dtype),
                   ((0, K_p - N), (0, in_p - in_features)))
    adj_pd = jnp.pad(adj.astype(compute_dtype),
                     ((0, M_p - N), (0, K_p - N)))
    w_pd = jnp.pad(weight.astype(compute_dtype),
                   ((0, in_p - in_features), (0, out_p - out_features)))

    # --- truthful cost estimate ---------------------------------------------
    cost = pl.CostEstimate(
        flops=2 * M_p * K_p * out_p            # adj @ support
        + 2 * grid_i * K_p * in_p * out_p,     # support recompute per row tile
        transcendentals=0,
        bytes_accessed=(
            M_p * K_p * cdt.itemsize                 # adj streamed exactly once
            + grid_i * K_p * in_p * cdt.itemsize     # x re-read per row-tile sweep
            + in_p * out_p * cdt.itemsize            # weight (VMEM-resident)
            + M_p * out_p * jnp.dtype(out_dtype).itemsize  # output written once
        ),
    )

    out_padded = pl.pallas_call(
        _gcn_fused_kernel,
        out_shape=jax.ShapeDtypeStruct((M_p, out_p), out_dtype),
        grid_spec=pltpu.PrefetchScalarGridSpec(
            num_scalar_prefetch=0,
            grid=(grid_i, grid_k),
            in_specs=[
                pl.BlockSpec((tk_eff, in_p), lambda i, k: (k, 0)),    # x
                pl.BlockSpec((tm_eff, tk_eff), lambda i, k: (i, k)),  # adj
                pl.BlockSpec((in_p, out_p), lambda i, k: (0, 0)),     # weight
            ],
            out_specs=pl.BlockSpec((tm_eff, out_p), lambda i, k: (i, 0)),
            scratch_shapes=[pltpu.VMEM((tm_eff, out_p), jnp.float32)],
        ),
        compiler_params=pltpu.CompilerParams(
            # Row tiles are independent -> megacore-shardable; the k reduction
            # carries the accumulator and must stay serial.
            dimension_semantics=("parallel", "arbitrary"),
        ),
        cost_estimate=cost,
    )(x_pd, adj_pd, w_pd)

    return out_padded[:N, :out_features]


def xavier_uniform(key, shape, dtype=jnp.float32):
    """Matches torch.nn.init.xavier_uniform_ (gain=1)."""
    fan_in, fan_out = shape
    bound = math.sqrt(6.0 / (fan_in + fan_out))
    return jax.random.uniform(key, shape, dtype, minval=-bound, maxval=bound)


if __name__ == "__main__":
    key = jax.random.PRNGKey(0)

    def make_case(case_key, N, in_features, out_features):
        k_x, k_adj, k_w = jax.random.split(case_key, 3)
        x = jax.random.normal(k_x, (N, in_features), dtype=jnp.float32)
        # Symmetric row-normalized dense adjacency (deterministic).
        a = (jax.random.uniform(k_adj, (N, N)) > 0.9).astype(jnp.float32)
        a = jnp.minimum(a + a.T + jnp.eye(N, dtype=jnp.float32), 1.0)
        adj = a / jnp.sum(a, axis=1, keepdims=True)
        w = xavier_uniform(k_w, (in_features, out_features))
        return x, adj, w

    k1, k2 = jax.random.split(key)

    # Case 1: small aligned shapes (N=256, in=128, out=128).
    x, adj, w = make_case(k1, 256, 128, 128)
    out = jax.block_until_ready(graph_convolution(x, adj, w))
    ref = adj @ (x @ w)
    assert out.shape == ref.shape
    # bf16 inputs with f32 accumulation -> loosened tolerance vs f32 reference.
    assert jnp.allclose(out, ref, atol=5e-2, rtol=5e-2), "case 1 mismatch"

    # Case 2: ragged + narrow-head shapes exercising the padding path
    # (N=200, in=100, out=7 -- a Cora-style classifier head in miniature).
    x2, adj2, w2 = make_case(k2, 200, 100, 7)
    out2 = jax.block_until_ready(graph_convolution(x2, adj2, w2))
    ref2 = adj2 @ (x2 @ w2)
    assert out2.shape == ref2.shape
    assert jnp.allclose(out2, ref2, atol=5e-2, rtol=5e-2), "case 2 mismatch"

    print("KERNEL_OK")
</pallas_src>

<mosaic_0001>
module attributes {stable_mosaic.version = 11 : i64} {
  func.func @_gcn_fused_kernel(%arg0: i32, %arg1: i32, %arg2: memref<256x128xbf16, #tpu.memory_space<vmem>>, %arg3: memref<128x256xbf16, #tpu.memory_space<vmem>>, %arg4: memref<128x128xbf16, #tpu.memory_space<vmem>>, %arg5: memref<128x128xf32, #tpu.memory_space<vmem>>, %arg6: memref<128x128xf32, #tpu.memory_space<vmem>>) attributes {dimension_semantics = [#tpu.dimension_semantics<parallel>, #tpu.dimension_semantics<arbitrary>], iteration_bounds = array<i64: 2, 1>, scalar_prefetch = 0 : i64, scratch_operands = 1 : i64, tpu.core_type = #tpu.core_type<tc>, window_params = [{transform_indices = @transform_0, window_bounds = array<i64: 256, 128>}, {transform_indices = @transform_1, window_bounds = array<i64: 128, 256>}, {pipeline_mode = #tpu.pipeline_mode<synchronous>, transform_indices = @transform_2, window_bounds = array<i64: 128, 128>}, {transform_indices = @transform_3, window_bounds = array<i64: 128, 128>}]} {
    %c0_i32 = arith.constant 0 : i32
    %0 = arith.cmpi eq, %arg1, %c0_i32 : i32
    %1 = arith.extui %0 : i1 to i32
    %c0_i32_0 = arith.constant 0 : i32
    %2 = arith.cmpi ne, %1, %c0_i32_0 : i32
    scf.if %2 {
      %cst_13 = arith.constant 0.000000e+00 : f32
      %15 = vector.broadcast %cst_13 : f32 to vector<128x128xf32>
      %c0_14 = arith.constant 0 : index
      %c0_15 = arith.constant 0 : index
      %16 = vector.load %arg6[%c0_14, %c0_15] : memref<128x128xf32, #tpu.memory_space<vmem>>, vector<128x128xf32>
      tpu.vector_store %arg6[%c0_14, %c0_15], %15 {strides = array<i32>} : memref<128x128xf32, #tpu.memory_space<vmem>>, vector<128x128xf32>,
    } else {
    }
    %c0 = arith.constant 0 : index
    %c0_1 = arith.constant 0 : index
    %3 = vector.load %arg2[%c0, %c0_1] : memref<256x128xbf16, #tpu.memory_space<vmem>>, vector<256x128xbf16>
    %c0_2 = arith.constant 0 : index
    %c0_3 = arith.constant 0 : index
    %4 = vector.load %arg4[%c0_2, %c0_3] : memref<128x128xbf16, #tpu.memory_space<vmem>>, vector<128x128xbf16>
    %cst = arith.constant dense<0.000000e+00> : vector<256x128xf32>
    %5 = tpu.matmul %3, %4, %cst {dimension_numbers = #tpu.dot_dimension_numbers<[1], [0], [0], [1], [0, 0, 1, 1], [], []>} : vector<256x128xbf16>, vector<128x128xbf16>, vector<256x128xf32> -> vector<256x128xf32>
    %c0_4 = arith.constant 0 : index
    %c0_5 = arith.constant 0 : index
    %6 = vector.load %arg6[%c0_4, %c0_5] : memref<128x128xf32, #tpu.memory_space<vmem>>, vector<128x128xf32>
    %c0_6 = arith.constant 0 : index
    %c0_7 = arith.constant 0 : index
    %7 = vector.load %arg3[%c0_6, %c0_7] : memref<128x256xbf16, #tpu.memory_space<vmem>>, vector<128x256xbf16>
    %8 = arith.truncf %5 : vector<256x128xf32> to vector<256x128xbf16>
    %cst_8 = arith.constant dense<0.000000e+00> : vector<128x128xf32>
    %9 = tpu.matmul %7, %8, %cst_8 {dimension_numbers = #tpu.dot_dimension_numbers<[1], [0], [0], [1], [0, 0, 1, 1], [], []>} : vector<128x256xbf16>, vector<256x128xbf16>, vector<128x128xf32> -> vector<128x128xf32>
    %10 = arith.addf %6, %9 : vector<128x128xf32>
    %c0_9 = arith.constant 0 : index
    %c0_10 = arith.constant 0 : index
    %11 = vector.load %arg6[%c0_9, %c0_10] : memref<128x128xf32, #tpu.memory_space<vmem>>, vector<128x128xf32>
    tpu.vector_store %arg6[%c0_9, %c0_10], %10 {strides = array<i32>} : memref<128x128xf32, #tpu.memory_space<vmem>>, vector<128x128xf32>,
    %c0_i32_11 = arith.constant 0 : i32
    %12 = arith.cmpi eq, %arg1, %c0_i32_11 : i32
    %13 = arith.extui %12 : i1 to i32
    %c0_i32_12 = arith.constant 0 : i32
    %14 = arith.cmpi ne, %13, %c0_i32_12 : i32
    scf.if %14 {
      %c0_13 = arith.constant 0 : index
      %c0_14 = arith.constant 0 : index
      %15 = vector.load %arg6[%c0_13, %c0_14] : memref<128x128xf32, #tpu.memory_space<vmem>>, vector<128x128xf32>
      %c0_15 = arith.constant 0 : index
      %c0_16 = arith.constant 0 : index
      %16 = vector.load %arg5[%c0_15, %c0_16] : memref<128x128xf32, #tpu.memory_space<vmem>>, vector<128x128xf32>
      tpu.vector_store %arg5[%c0_15, %c0_16], %15 {strides = array<i32>} : memref<128x128xf32, #tpu.memory_space<vmem>>, vector<128x128xf32>,
    } else {
    }
    return
  }
  func.func @transform_0(%arg0: i32, %arg1: i32) -> (i32, i32) {
    %c0_i32 = arith.constant 0 : i32
    %c0_i32_0 = arith.constant 0 : i32
    return %arg1, %c0_i32 : i32, i32
  }
  func.func @transform_1(%arg0: i32, %arg1: i32) -> (i32, i32) {
    %c0_i32 = arith.constant 0 : i32
    return %arg0, %arg1 : i32, i32
  }
  func.func @transform_2(%arg0: i32, %arg1: i32) -> (i32, i32) {
    %c0_i32 = arith.constant 0 : i32
    %c0_i32_0 = arith.constant 0 : i32
    %c0_i32_1 = arith.constant 0 : i32
    return %c0_i32, %c0_i32_0 : i32, i32
  }
  func.func @transform_3(%arg0: i32, %arg1: i32) -> (i32, i32) {
    %c0_i32 = arith.constant 0 : i32
    %c0_i32_0 = arith.constant 0 : i32
    return %arg0, %c0_i32 : i32, i32
  }
}

</mosaic_0001>

<bundles_post_ra>
// kernel: tpu_custom_call.1
= control target key start
LH: loop header
LB: loop body
LE: loop exit
PB: predicated region body
PF: predicated region fallthrough
CT: control target
= control target key end

     0   :  { %8 = vsyncpa [#allocation4], 0  ;;  %s1864_s0 = inlined_call_operand.hbm [shape: bf16[256,128], index: 0, kind: input, shape index: {}]   ;;  %s1865_s1 = inlined_call_operand.hbm [shape: bf16[256,256], index: 1, kind: input, shape index: {}]   ;;  %s1866_s2 = inlined_call_operand.hbm [shape: bf16[128,128], index: 2, kind: input, shape index: {}]   ;;  %s1867_s3 = inlined_call_operand.hbm [shape: f32[256,128], index: 3, kind: output, shape index: {}]  }
   0x1   :  { %9 = vsyncpa [#allocation7], 0 }
   0x2   :  { %11 = vsyncpa [#allocation7 + $0x1], 0 }
   0x3   :  { %12 = vsyncpa [#allocation5], 0 }
   0x4   :  { %14 = vsyncpa [#allocation5 + $0x1], 0  ;;  %s1578_s12 = smov 0   ;;  %s1580_s13 = smov 0  }
   0x5   :  { %s1582_s14 = smov 0   ;;  %s1584_s15 = smov 0  }
   0x6   :  { %s1586_s16 = smov 0   ;;  %s1588_s17 = smov 0  }
   0x7 LB: > { %s1609_s18 = sadd.s32 4294967295, %s1546_s17   ;;  %s1035_s19 = sadd.s32 4294967294, %s1546_s17   ;;  %s1546_s17 = sphi %s1588_s17, %s20_s17   ;;  %s1542_s16 = sphi %s1586_s16, %s1894_s16   ;;  %s1538_s15 = sphi %s1584_s15, %s1893_s15   ;;  %s1534_s14 = sphi %s1582_s14, %s1892_s14   ;;  %s1530_s13 = sphi %s1580_s13, %s1891_s13   ;;  %s1526_s12 = sphi %s1578_s12, %s1890_s12  }
   0x8   : > { %p74_p0 = scmp.ne.s32.totalorder %s1534_s14, %s1530_s13  ;;  %p75_p1 = scmp.eq.s32.totalorder %s1546_s17, 0 }
   0x9   : > { %p80_p2 = scmp.ne.s32.totalorder %s1530_s13, %s1526_s12  ;;  %p1868_p3 = scmp.eq.s32.totalorder %s1609_s18, 0 }
   0xa   : > { %p1618_p4 = por %p75_p1, %p74_p0  ;;  %p125_p5 = scmp.eq.s32.totalorder %s1609_s18, 1 }
   0xb   : > { %p1625_p6 = por %p1868_p3, %p80_p2  ;;  %p131_p7 = scmp.eq.s32.totalorder %s1035_s19, 1 }
   0xc   : > { %p1629_p8 = por %p125_p5, %p74_p0  ;;  %p1036_p9 = scmp.ge.s32.totalorder %s1546_s17, 1 }
   0xd   : > { %s1874_s21 = scalar_select %p1625_p6, 1, 0 }
   0xe   : > { %s1875_s22 = scalar_select %p1629_p8, 1, 0 }
   0xf   : > { %p1634_p10 = por %p131_p7, %p80_p2  ;;  %p138_p11 = scmp.lt.s32.totalorder %s1546_s17, 3 }
  0x10   : > { %s1548_s25 = smov [#allocation8]   ;;  %p1262_p0 = scmp.lt.s32.totalorder %s1546_s17, 2 }
  0x11   : > { %s1876_s23 = scalar_select %p1634_p10, 1, 0 }
  0x12   : > { %p1639_p12 = pnand %p1036_p9, %p138_p11  ;;  %s166_s26 = sshll.u32 %s1548_s25, 4  ;;  %s167_s26 = int_to_ptr.vmem [resolvable:$true] %s166_s26 }
  0x13   : > { %p1655_p2 = pnand %p1262_p0, %p1618_p4  ;;  %s1370_s4 = scalar_lea.hbm %s1866_s2, 1024 }
  0x14   : > { %s1877_s24 = scalar_select %p1639_p12, 1, 0 }
  0x15   : > { %p1245_p1 = pneg %p1639_p12  ;;  %p1371_p7 = scmp.ne.s32.totalorder %s1866_s2, %s1370_s4 }
  0x16   : > { %s1879_s28 = scalar_select %p1655_p2, 1, 0 }
  0x17   : > { %p1649_p5 = pnand %p1245_p1, %p1868_p3  ;;  %p1377_p4 = scmp.lt.u32.totalorder %s1370_s4, %s1866_s2 }
  0x19   : > { %p1372_p9 = pneg %p1649_p5 }
  0x1b   : > { %p1373_p11 = pnand %p1372_p9, %p1371_p7 }
  0x1d   : > { %p1374_p1 = pneg %p1373_p11 }
  0x1f   : > { %p1379_p0 = pnand %p1377_p4, %p1374_p1 }
  0x21   : > { %1382 = shalt.err (!%p1379_p0)
}
  0x22   : > { %s1383_s9 = scalar_lea.vmem %s167_s26, 1024  ;;  %p1391_p8 = scmp.lt.s32.totalorder %s167_s26, %s167_s26 }
  0x23   : > { %p1384_p13 = scmp.ne.s32.totalorder %s167_s26, %s1383_s9  ;;  %p1392_p6 = scmp.lt.s32.totalorder %s1383_s9, %s1383_s9 }
  0x25   : > { %p1386_p3 = pnand %p1384_p13, %p1372_p9  ;;  %p1393_p12 = por %p1392_p6, %p1391_p8 }
  0x27   : > { %p1387_p10 = pneg %p1386_p3 }
  0x29   : > { %p1394_p2 = pnand %p1393_p12, %p1387_p10 }
  0x2b   : > { %1397 = shalt.err (!%p1394_p2)
}
  0x2c   : > { %s1549_s10 = smov 64   ;;  %s1550_s11 = smov 4  }
  0x2d   : > { %1251 = dma.hbm_to_vmem [thread:$0]  (!%p1649_p5), %s1866_s2, 1024, %s167_s26, [#allocation7], %s1549_s10, %s1549_s10, %s1550_s11  }
  0x2e   : > { %s1551_s25 = smov [#allocation3]   ;;  %s1398_s5 = scalar_lea.hbm %s1864_s0, 2048 }
  0x2f   : > { %s153_s29 = sshll.u32 %s1551_s25, 4  ;;  %p1399_p3 = scmp.ne.s32.totalorder %s1864_s0, %s1398_s5  ;;  %s154_s29 = int_to_ptr.vmem [resolvable:$true] %s153_s29 }
  0x30   : > { %p1405_p10 = scmp.lt.u32.totalorder %s1398_s5, %s1864_s0 }
  0x31   : > { %p1401_p6 = pnand %p1399_p3, %p1372_p9 }
  0x33   : > { %p1402_p8 = pneg %p1401_p6 }
  0x35   : > { %p1407_p12 = pnand %p1405_p10, %p1402_p8 }
  0x37   : > { %1410 = shalt.err (!%p1407_p12)
}
  0x38   : > { %s1411_s26 = scalar_lea.vmem %s154_s29, 2048  ;;  %p1419_p11 = scmp.lt.s32.totalorder %s154_s29, %s154_s29 }
  0x39   : > { %p1412_p13 = scmp.ne.s32.totalorder %s154_s29, %s1411_s26  ;;  %p1420_p1 = scmp.lt.s32.totalorder %s1411_s26, %s1411_s26 }
  0x3b   : > { %p1414_p2 = pnand %p1412_p13, %p1372_p9  ;;  %p1421_p4 = por %p1420_p1, %p1419_p11 }
  0x3d   : > { %p1415_p7 = pneg %p1414_p2 }
  0x3f   : > { %p1422_p0 = pnand %p1421_p4, %p1415_p7 }
  0x41   : > { %1425 = shalt.err (!%p1422_p0)
}
  0x42   : > { %1248 = dma.hbm_to_vmem [thread:$0]  (!%p1649_p5), %s1864_s0, 2048, %s154_s29, [#allocation4], %s1549_s10, %s1549_s10, %s1550_s11  }
  0x43   : > { %s67_s25 = sadd.s32 1, %s1534_s14  ;;  %s32_s30 = sadd.s32 1, %s1542_s16 }
  0x44   : > { %s180_s4 = sand.u32 1, %s1546_s17   ;;  %p34_p9 = scmp.ge.s32.totalorder %s32_s30, 2 }
  0x45   : > { %s182_s5 = sand.u32 1, %s1534_s14   ;;  %s1095_s6 = sshll.u32 %s1542_s16, 11 }
  0x46   : > { %s1896_s30 = smov (%p34_p9, %s32_s30), 0  ;;  %s1040_s27 = sshll.u32 %s182_s5, 7 }
  0x47   : > { %s1711_s9 = scalar_lea.hbm %s1865_s1, %s1095_s6  ;;  %s62_s10 = ssub.s32 %s1542_s16, %s1896_s30 }
  0x48   : > { %p65_p5 = scmp.eq.s32.totalorder %s62_s10, 0  ;;  %s184_s11 = scalar_lea.vmem [#allocation6], %s1040_s27 }
  0x49   : > { %s194_s29 = sshll.u32 %s184_s11, 4  ;;  %s1720_s19 = scalar_lea.sflag [#allocation7], %s180_s4  ;;  %s1715_s29 = int_to_ptr.vmem [resolvable:$true] %s194_s29 }
  0x4a   : > { %s1718_s26 = scalar_select %p65_p5, %s1534_s14, %s67_s25  }
  0x4b   : > { %s1426_s20 = scalar_lea.hbm %s1711_s9, 2048  ;;  %p1880_p6 = scmp.ne.s32.totalorder %s1879_s28, 0 }
  0x4c   : > { %p1427_p3 = scmp.ne.s32.totalorder %s1711_s9, %s1426_s20  ;;  %s1431_s7 = scalar_lea.hbm %s1865_s1, 4096 }
  0x4d   : > { %p1428_p8 = pneg %p1880_p6  ;;  %p1432_p13 = scmp.lt.u32.totalorder %s1711_s9, %s1865_s1 }
  0x4e   : > { %p1433_p2 = scmp.lt.u32.totalorder %s1431_s7, %s1426_s20  ;;  %p1435_p11 = scmp.lt.u32.totalorder %s1426_s20, %s1711_s9 }
  0x4f   : > { %p1429_p10 = pnand %p1428_p8, %p1427_p3 }
  0x50   : > { %p1434_p7 = por %p1433_p2, %p1432_p13 }
  0x51   : > { %p1430_p12 = pneg %p1429_p10 }
  0x52   : > { %p1436_p1 = por %p1435_p11, %p1434_p7 }
  0x54   : > { %p1437_p4 = pnand %p1436_p1, %p1430_p12 }
  0x56   : > { %1440 = shalt.err (!%p1437_p4)
}
  0x57   : > { %s1441_s25 = scalar_lea.vmem %s1715_s29, 2048  ;;  %s1552_s4 = smov [#allocation6]  }
  0x58   : > { %p1442_p0 = scmp.ne.s32.totalorder %s1715_s29, %s1441_s25  ;;  %s1446_s10 = sshll.u32 %s1552_s4, 4  ;;  %s1447_s10 = int_to_ptr.vmem [resolvable:$false] %s1446_s10 }
  0x59   : > { %s1448_s11 = scalar_lea.vmem %s1447_s10, 4096  ;;  %p1449_p3 = scmp.lt.s32.totalorder %s1715_s29, %s1447_s10 }
  0x5a   : > { %p1444_p9 = pnand %p1442_p0, %p1428_p8  ;;  %p1450_p10 = scmp.lt.s32.totalorder %s1448_s11, %s1441_s25 }
  0x5c   : > { %p1445_p5 = pneg %p1444_p9  ;;  %p1451_p13 = por %p1450_p10, %p1449_p3 }
  0x5e   : > { %p1452_p2 = pnand %p1451_p13, %p1445_p5 }
  0x60   : > { %1455 = shalt.err (!%p1452_p2)
}
  0x61   : > { %s1553_s20 = smov 128   ;;  %s1554_s5 = smov 8  }
  0x62   : > { %1255 = dma.hbm_to_vmem [thread:$0]  (!%p1880_p6), %s1711_s9, 2048, %s1715_s29, %s1720_s19, %s1553_s20, %s1553_s20, %s1554_s5  }
  0x63   : > { %p1881_p8 = scmp.ne.s32.totalorder %s1877_s24, 0 }
  0x64   : > { %p1882_p12 = scmp.eq.s32.totalorder (!%p1881_p8), %s1609_s18, 0 }
  0x65   : > { %206 = sbr.rel (%p1881_p8) target bundleno = 719 (0x2cf), region = 32 }
  0x6c   : > { %1509 = dma.done.wait (%p1882_p12), [#allocation4], 2048   ;;  %p1883_p7 = pmov %p1882_p12 }
  0x6d   : > { %s212_s6 = sand.u32 1, %s1609_s18   ;;  %s214_s7 = sand.u32 1, %s1530_s13  }
  0x6e   : > { %1511 = vsyncadd (%p1883_p7), [#allocation4], 4294965248  ;;  %s1758_s27 = sshll.u32 %s214_s7, 7  ;;  %s213_s28 = scalar_lea.sflag [#allocation7], %s212_s6 }
  0x6f   : > { %s1761_s9 = scalar_lea.vmem [#allocation6], %s1758_s27  ;;  %p1884_p6 = scmp.ne.s32.totalorder %s1874_s21, 0 }
  0x71   : > { %1513 = dma.done.wait (%p1884_p6), %s213_s28, 2048  }
  0x72   : > { %1515 = vsyncadd (%p1884_p6), %s213_s28, 4294965248  ;;  %p1885_p11 = pmov %p1883_p7 }
  0x73   : > { %p1886_p1 = pmov %p1883_p7 }
  0x74   : > { %1517 = dma.done.wait (%p1885_p11), [#allocation7], 1024  }
  0x75   : > { %1519 = vsyncadd (%p1886_p1), [#allocation7], 4294966272  ;;  %v1322_v0 = vld [vmem:[#allocation8] sm:$0xff]   ;;  %v1323_v1 = vld [vmem:[#allocation8 + $0x8] sm:$0xff]   ;;  %s1788_s18 = scalar_lea.vmem [#allocation9], %s1758_s27  ;;  %s1096_s21 = sshll.u32 %s1538_s15, 11 }
  0x76   : > { %1185 = vmatprep.subr.bf16.mxu0 %v1322_v0  ;;  %v1324_v2 = vld [vmem:[#allocation8 + $0x10] sm:$0xff]   ;;  %v1325_v3 = vld [vmem:[#allocation8 + $0x18] sm:$0xff]   ;;  %v1330_v4 = vld [vmem:[#allocation3] sm:$0xff]   ;;  %s927_s24 = sshll.u32 %s1788_s18, 4  ;;  %s1809_s8 = scalar_lea.hbm %s1867_s3, %s1096_s21  ;;  %s1811_s24 = int_to_ptr.vmem [resolvable:$true] %s927_s24 }
  0x77   : > { %1186 = vmatpush3.bf16.msra.mxu0 %v1322_v0  ;;  %1201 = vmatprep.mubr.bf16.mxu0 %v1330_v4  ;;  %v1326_v5 = vld [vmem:[#allocation8 + $0x20] sm:$0xff]   ;;  %v1327_v6 = vld [vmem:[#allocation8 + $0x28] sm:$0xff]   ;;  %v1328_v7 = vld [vmem:[#allocation8 + $0x30] sm:$0xff]   ;;  %s1817_s15 = scalar_lea.sflag [#allocation5], %s214_s7  ;;  %s1456_s25 = scalar_lea.vmem %s1811_s24, 2048 }
  0x78   : > { %1187 = vmatprep.subr.bf16.mxu0 %v1323_v1  ;;  %v1329_v8 = vld [vmem:[#allocation8 + $0x38] sm:$0xff]   ;;  %v1331_v9 = vld [vmem:[#allocation3 + $0x8] sm:$0xff]   ;;  %v1332_v10 = vld [vmem:[#allocation3 + $0x10] sm:$0xff]   ;;  %p1457_p4 = scmp.ne.s32.totalorder %s1811_s24, %s1456_s25  ;;  %p1887_p0 = scmp.ne.s32.totalorder %s1875_s22, 0 }
  0x79   : > { %v1333_v11 = vld [vmem:[#allocation3 + $0x18] sm:$0xff]   ;;  %v1334_v12 = vld [vmem:[#allocation3 + $0x20] sm:$0xff]   ;;  %v1335_v13 = vld [vmem:[#allocation3 + $0x28] sm:$0xff]   ;;  %s1555_s4 = smov [#allocation9]  }
  0x7a   : > { %v1336_v14 = vld [vmem:[#allocation3 + $0x30] sm:$0xff]   ;;  %v1337_v15 = vld [vmem:[#allocation3 + $0x38] sm:$0xff]   ;;  %v1338_v16 = vld [vmem:[#allocation3 + $0x40] sm:$0xff]   ;;  %p1458_p9 = pnand %p1457_p4, %p1887_p0  ;;  %s1460_s10 = sshll.u32 %s1555_s4, 4  ;;  %s1461_s10 = int_to_ptr.vmem [resolvable:$false] %s1460_s10 }
  0x7b   : > { %1188 = vmatpush3.bf16.msra.mxu0 %v1323_v1  ;;  %v1339_v17 = vld [vmem:[#allocation3 + $0x48] sm:$0xff]   ;;  %v1340_v18 = vld [vmem:[#allocation3 + $0x50] sm:$0xff]   ;;  %v1341_v19 = vld [vmem:[#allocation3 + $0x58] sm:$0xff]   ;;  %s1462_s11 = scalar_lea.vmem %s1461_s10, 4096  ;;  %p1463_p3 = scmp.lt.s32.totalorder %s1811_s24, %s1461_s10 }
  0x7c   : > { %1189 = vmatprep.subr.bf16.mxu0 %v1324_v2  ;;  %v1342_v20 = vld [vmem:[#allocation3 + $0x60] sm:$0xff]   ;;  %v1343_v21 = vld [vmem:[#allocation3 + $0x68] sm:$0xff]   ;;  %v1344_v22 = vld [vmem:[#allocation3 + $0x70] sm:$0xff]   ;;  %p1459_p5 = pneg %p1458_p9  ;;  %p1464_p10 = scmp.lt.s32.totalorder %s1462_s11, %s1456_s25 }
  0x7d   : > { %v1345_v23 = vld [vmem:[#allocation3 + $0x78] sm:$0xff]   ;;  %v1348_v24 = vld [vmem:[%s1761_s9 + $0x4] ss:$8 sps:$4 sm:$0xff]  }
  0x7e   : > { %781 = vmatprep.mubr.bf16.mxu1 %v1348_v24  ;;  %p1465_p13 = por %p1464_p10, %p1463_p3 }
  0x7f   : > { %1190 = vmatpush3.bf16.msra.mxu0 %v1324_v2 }
  0x80   : > { %1191 = vmatprep.subr.bf16.mxu0 %v1325_v3  ;;  %p1466_p2 = pnand %p1465_p13, %p1459_p5 }
  0x83   : > { %1192 = vmatpush3.bf16.msra.mxu0 %v1325_v3 }
  0x84   : > { %1193 = vmatprep.subr.bf16.mxu0 %v1326_v5 }
  0x87   : > { %1194 = vmatpush3.bf16.msra.mxu0 %v1326_v5 }
  0x88   : > { %1195 = vmatprep.subr.bf16.mxu0 %v1327_v6 }
  0x8b   : > { %1196 = vmatpush3.bf16.msra.mxu0 %v1327_v6 }
  0x8c   : > { %1197 = vmatprep.subr.bf16.mxu0 %v1328_v7 }
  0x8f   : > { %1198 = vmatpush3.bf16.msra.mxu0 %v1328_v7 }
  0x90   : > { %1199 = vmatprep.subr.bf16.mxu0 %v1329_v8 }
  0x93   : > { %1200 = vmatpush3.bf16.msra.mxu0 %v1329_v8 }
  0x96   : > { %1202 = vmatmul.mubr.bf16.vlgmr.msra.gmra.mrb[0].mxu0 %v1331_v9  ;;  %v1346_v9 = vld [vmem:[%s1761_s9] ss:$8 sps:$4 sm:$0xff]  }
  0x97   : > { %1205 = vmatprep.mubr.bf16.mxu0 %v1332_v10  ;;  %v1349_v10 = vld [vmem:[%s1761_s9 + $0x14] ss:$8 sps:$4 sm:$0xff]  }
  0x9e   : > { %1206 = vmatmul.mubr.bf16.gmra.mrb[4].mxu0 %v1333_v11  ;;  %v1351_v11 = vld [vmem:[%s1761_s9 + $0x10] ss:$8 sps:$4 sm:$0xff]  }
  0x9f   : > { %1209 = vmatprep.mubr.bf16.mxu0 %v1334_v12  ;;  %v1352_v12 = vld [vmem:[%s1761_s9 + $0x24] ss:$8 sps:$4 sm:$0xff]  }
  0xa6   : > { %1210 = vmatmul.mubr.bf16.gmra.mrb[8].mxu0 %v1335_v13  ;;  %v1354_v13 = vld [vmem:[%s1761_s9 + $0x20] ss:$8 sps:$4 sm:$0xff]  }
  0xa7   : > { %1213 = vmatprep.mubr.bf16.mxu0 %v1336_v14  ;;  %v1355_v14 = vld [vmem:[%s1761_s9 + $0x34] ss:$8 sps:$4 sm:$0xff]  }
  0xae   : > { %1214 = vmatmul.mubr.bf16.gmra.mrb[12].mxu0 %v1337_v15  ;;  %v1357_v15 = vld [vmem:[%s1761_s9 + $0x30] ss:$8 sps:$4 sm:$0xff]  }
  0xaf   : > { %1217 = vmatprep.mubr.bf16.mxu0 %v1338_v16  ;;  %v1358_v16 = vld [vmem:[%s1761_s9 + $0x44] ss:$8 sps:$4 sm:$0xff]  }
  0xb6   : > { %1218 = vmatmul.mubr.bf16.gmra.mrb[16].mxu0 %v1339_v17  ;;  %v1360_v17 = vld [vmem:[%s1761_s9 + $0x40] ss:$8 sps:$4 sm:$0xff]  }
  0xb7   : > { %1221 = vmatprep.mubr.bf16.mxu0 %v1340_v18  ;;  %v1361_v18 = vld [vmem:[%s1761_s9 + $0x54] ss:$8 sps:$4 sm:$0xff]  }
  0xbe   : > { %1222 = vmatmul.mubr.bf16.gmra.mrb[20].mxu0 %v1341_v19  ;;  %v1363_v19 = vld [vmem:[%s1761_s9 + $0x50] ss:$8 sps:$4 sm:$0xff]  }
  0xbf   : > { %1225 = vmatprep.mubr.bf16.mxu0 %v1342_v20  ;;  %v1364_v20 = vld [vmem:[%s1761_s9 + $0x64] ss:$8 sps:$4 sm:$0xff]  }
  0xc6   : > { %1226 = vmatmul.mubr.bf16.gmra.mrb[24].mxu0 %v1343_v21  ;;  %v1366_v21 = vld [vmem:[%s1761_s9 + $0x60] ss:$8 sps:$4 sm:$0xff]  }
  0xc7   : > { %1229 = vmatprep.mubr.bf16.mxu0 %v1344_v22  ;;  %v1367_v22 = vld [vmem:[%s1761_s9 + $0x74] ss:$8 sps:$4 sm:$0xff]  }
  0xce   : > { %1230 = vmatmul.mubr.bf16.gmra.mrb[28].mxu0 %v1345_v23  ;;  %v1369_v23 = vld [vmem:[%s1761_s9 + $0x70] ss:$8 sps:$4 sm:$0xff]  }
 0x169   : > { %v1203_v25 = vpop.f32.mrb[0].mxu0 }
 0x16a   : > { %v494_v26 = vpop.f32.mrb[1].mxu0 }
 0x16b   : > { %v1204_v27 = vpop.f32.mrb[2].mxu0 }
 0x16c   : > { %v654_v28 = vpack.c.bf16 %v1204_v27, %v1203_v25  ;;  %v497_v29 = vpop.f32.mrb[3].mxu0 }
 0x16d   : > { %v653_v30 = vpack.c.bf16 %v497_v29, %v494_v26 }
 0x171   : > { %v1207_v31 = vpop.f32.mrb[4].mxu0 }
 0x172   : > { %v510_v32 = vpop.f32.mrb[5].mxu0 }
 0x173   : > { %v1208_v33 = vpop.f32.mrb[6].mxu0 }
 0x174   : > { %v656_v34 = vpack.c.bf16 %v1208_v33, %v1207_v31  ;;  %v513_v35 = vpop.f32.mrb[7].mxu0 }
 0x175   : > { %v655_v36 = vpack.c.bf16 %v513_v35, %v510_v32 }
 0x179   : > { %v1211_v37 = vpop.f32.mrb[8].mxu0 }
 0x17a   : > { %v526_v38 = vpop.f32.mrb[9].mxu0 }
 0x17b   : > { %v1212_v39 = vpop.f32.mrb[10].mxu0 }
 0x17c   : > { %v658_v40 = vpack.c.bf16 %v1212_v39, %v1211_v37  ;;  %v529_v41 = vpop.f32.mrb[11].mxu0 }
 0x17d   : > { %v657_v42 = vpack.c.bf16 %v529_v41, %v526_v38 }
 0x181   : > { %v1215_v43 = vpop.f32.mrb[12].mxu0 }
 0x182   : > { %v542_v44 = vpop.f32.mrb[13].mxu0 }
 0x183   : > { %v1216_v45 = vpop.f32.mrb[14].mxu0 }
 0x184   : > { %v660_v46 = vpack.c.bf16 %v1216_v45, %v1215_v43  ;;  %v545_v47 = vpop.f32.mrb[15].mxu0 }
 0x185   : > { %v659_v48 = vpack.c.bf16 %v545_v47, %v542_v44 }
 0x189   : > { %v1219_v49 = vpop.f32.mrb[16].mxu0 }
 0x18a   : > { %v558_v50 = vpop.f32.mrb[17].mxu0 }
 0x18b   : > { %v1220_v51 = vpop.f32.mrb[18].mxu0 }
 0x18c   : > { %v662_v52 = vpack.c.bf16 %v1220_v51, %v1219_v49  ;;  %v561_v53 = vpop.f32.mrb[19].mxu0 }
 0x18d   : > { %v661_v54 = vpack.c.bf16 %v561_v53, %v558_v50 }
 0x18f   : > { %1121 = vmatprep.subr.bf16.mxu1 %v661_v54 }
 0x190   : > { %1122 = vmatpush3.bf16.msra.mxu1 %v653_v30 }
 0x191   : > { %v1223_v55 = vpop.f32.mrb[20].mxu0  ;;  %1123 = vmatprep.subr.bf16.mxu1 %v662_v52 }
 0x192   : > { %v574_v56 = vpop.f32.mrb[21].mxu0 }
 0x193   : > { %v1224_v57 = vpop.f32.mrb[22].mxu0 }
 0x194   : > { %v664_v58 = vpack.c.bf16 %v1224_v57, %v1223_v55  ;;  %v577_v59 = vpop.f32.mrb[23].mxu0  ;;  %1124 = vmatpush3.bf16.msra.mxu1 %v654_v28 }
 0x195   : > { %v663_v60 = vpack.c.bf16 %v577_v59, %v574_v56 }
 0x197   : > { %1125 = vmatprep.subr.bf16.mxu1 %v663_v60 }
 0x198   : > { %1126 = vmatpush3.bf16.msra.mxu1 %v655_v36 }
 0x199   : > { %v1227_v61 = vpop.f32.mrb[24].mxu0  ;;  %1127 = vmatprep.subr.bf16.mxu1 %v664_v58 }
 0x19a   : > { %v590_v62 = vpop.f32.mrb[25].mxu0 }
 0x19b   : > { %v1228_v63 = vpop.f32.mrb[26].mxu0 }
 0x19c   : > { %v666_v0 = vpack.c.bf16 %v1228_v63, %v1227_v61  ;;  %v593_v1 = vpop.f32.mrb[27].mxu0  ;;  %1128 = vmatpush3.bf16.msra.mxu1 %v656_v34 }
 0x19d   : > { %v665_v2 = vpack.c.bf16 %v593_v1, %v590_v62 }
 0x19f   : > { %1129 = vmatprep.subr.bf16.mxu1 %v665_v2 }
 0x1a0   : > { %1130 = vmatpush3.bf16.msra.mxu1 %v657_v42 }
 0x1a1   : > { %v1231_v3 = vpop.f32.mrb[28].mxu0  ;;  %1131 = vmatprep.subr.bf16.mxu1 %v666_v0 }
 0x1a2   : > { %v606_v4 = vpop.f32.mrb[29].mxu0 }
 0x1a3   : > { %v1232_v5 = vpop.f32.mrb[30].mxu0 }
 0x1a4   : > { %v668_v6 = vpack.c.bf16 %v1232_v5, %v1231_v3  ;;  %v609_v7 = vpop.f32.mrb[31].mxu0  ;;  %1132 = vmatpush3.bf16.msra.mxu1 %v658_v40 }
 0x1a5   : > { %v667_v8 = vpack.c.bf16 %v609_v7, %v606_v4 }
 0x1a7   : > { %1133 = vmatprep.subr.bf16.mxu1 %v667_v8 }
 0x1a8   : > { %1134 = vmatpush3.bf16.msra.mxu1 %v659_v48 }
 0x1a9   : > { %1135 = vmatprep.subr.bf16.mxu1 %v668_v6 }
 0x1ac   : > { %1136 = vmatpush3.bf16.msra.mxu1 %v660_v46 }
 0x1af   : > { %782 = vmatmul.mubr.bf16.vlgmr.msra.gmra.mrb[0].mxu1 %v1346_v9 }
 0x1b0   : > { %789 = vmatprep.mubr.bf16.mxu1 %v1349_v10 }
 0x1b7   : > { %790 = vmatmul.mubr.bf16.gmra.mrb[4].mxu1 %v1351_v11 }
 0x1b8   : > { %797 = vmatprep.mubr.bf16.mxu1 %v1352_v12 }
 0x1bf   : > { %798 = vmatmul.mubr.bf16.gmra.mrb[8].mxu1 %v1354_v13 }
 0x1c0   : > { %805 = vmatprep.mubr.bf16.mxu1 %v1355_v14 }
 0x1c7   : > { %806 = vmatmul.mubr.bf16.gmra.mrb[12].mxu1 %v1357_v15 }
 0x1c8   : > { %813 = vmatprep.mubr.bf16.mxu1 %v1358_v16 }
 0x1cf   : > { %814 = vmatmul.mubr.bf16.gmra.mrb[16].mxu1 %v1360_v17 }
 0x1d0   : > { %821 = vmatprep.mubr.bf16.mxu1 %v1361_v18 }
 0x1d7   : > { %822 = vmatmul.mubr.bf16.gmra.mrb[20].mxu1 %v1363_v19 }
 0x1d8   : > { %829 = vmatprep.mubr.bf16.mxu1 %v1364_v20 }
 0x1df   : > { %830 = vmatmul.mubr.bf16.gmra.mrb[24].mxu1 %v1366_v21 }
 0x1e0   : > { %837 = vmatprep.mubr.bf16.mxu1 %v1367_v22 }
 0x1e7   : > { %838 = vmatmul.mubr.bf16.gmra.mrb[28].mxu1 %v1369_v23 }
 0x282   : > { %v1137_v24 = vpop.f32.mrb[0].mxu1 }
 0x283   : > { %v1138_v25 = vpop.f32.mrb[1].mxu1 }
 0x284   : > { %v1139_v26 = vadd.f32 %v1138_v25, %v1137_v24  ;;  %v1140_v27 = vpop.f32.mrb[2].mxu1 }
 0x285   : > { %v1141_v28 = vpop.f32.mrb[3].mxu1 }
 0x286   : > { %897 = vst [vmem:[%s1788_s18] sm:$0xff] %v1139_v26  ;;  %v1142_v29 = vadd.f32 %v1141_v28, %v1140_v27 }
 0x288   : > { %898 = vst [vmem:[%s1788_s18 + $0x8] sm:$0xff] %v1142_v29 }
 0x28a   : > { %v1143_v30 = vpop.f32.mrb[4].mxu1 }
 0x28b   : > { %v1144_v31 = vpop.f32.mrb[5].mxu1 }
 0x28c   : > { %v1145_v32 = vadd.f32 %v1144_v31, %v1143_v30  ;;  %v1146_v33 = vpop.f32.mrb[6].mxu1 }
 0x28d   : > { %v1147_v34 = vpop.f32.mrb[7].mxu1 }
 0x28e   : > { %899 = vst [vmem:[%s1788_s18 + $0x10] sm:$0xff] %v1145_v32  ;;  %v1148_v35 = vadd.f32 %v1147_v34, %v1146_v33 }
 0x290   : > { %900 = vst [vmem:[%s1788_s18 + $0x18] sm:$0xff] %v1148_v35 }
 0x292   : > { %v1149_v36 = vpop.f32.mrb[8].mxu1 }
 0x293   : > { %v1150_v37 = vpop.f32.mrb[9].mxu1 }
 0x294   : > { %v1151_v38 = vadd.f32 %v1150_v37, %v1149_v36  ;;  %v1152_v39 = vpop.f32.mrb[10].mxu1 }
 0x295   : > { %v1153_v40 = vpop.f32.mrb[11].mxu1 }
 0x296   : > { %901 = vst [vmem:[%s1788_s18 + $0x20] sm:$0xff] %v1151_v38  ;;  %v1154_v41 = vadd.f32 %v1153_v40, %v1152_v39 }
 0x298   : > { %902 = vst [vmem:[%s1788_s18 + $0x28] sm:$0xff] %v1154_v41 }
 0x29a   : > { %v1155_v42 = vpop.f32.mrb[12].mxu1 }
 0x29b   : > { %v1156_v43 = vpop.f32.mrb[13].mxu1 }
 0x29c   : > { %v1157_v44 = vadd.f32 %v1156_v43, %v1155_v42  ;;  %v1158_v45 = vpop.f32.mrb[14].mxu1 }
 0x29d   : > { %v1159_v46 = vpop.f32.mrb[15].mxu1 }
 0x29e   : > { %903 = vst [vmem:[%s1788_s18 + $0x30] sm:$0xff] %v1157_v44  ;;  %v1160_v47 = vadd.f32 %v1159_v46, %v1158_v45 }
 0x2a0   : > { %904 = vst [vmem:[%s1788_s18 + $0x38] sm:$0xff] %v1160_v47 }
 0x2a2   : > { %v1161_v48 = vpop.f32.mrb[16].mxu1 }
 0x2a3   : > { %v1162_v49 = vpop.f32.mrb[17].mxu1 }
 0x2a4   : > { %v1163_v50 = vadd.f32 %v1162_v49, %v1161_v48  ;;  %v1164_v51 = vpop.f32.mrb[18].mxu1 }
 0x2a5   : > { %v1165_v52 = vpop.f32.mrb[19].mxu1 }
 0x2a6   : > { %905 = vst [vmem:[%s1788_s18 + $0x40] sm:$0xff] %v1163_v50  ;;  %v1166_v53 = vadd.f32 %v1165_v52, %v1164_v51 }
 0x2a8   : > { %906 = vst [vmem:[%s1788_s18 + $0x48] sm:$0xff] %v1166_v53 }
 0x2aa   : > { %v1167_v54 = vpop.f32.mrb[20].mxu1 }
 0x2ab   : > { %v1168_v55 = vpop.f32.mrb[21].mxu1 }
 0x2ac   : > { %v1169_v56 = vadd.f32 %v1168_v55, %v1167_v54  ;;  %v1170_v57 = vpop.f32.mrb[22].mxu1 }
 0x2ad   : > { %v1171_v58 = vpop.f32.mrb[23].mxu1 }
 0x2ae   : > { %907 = vst [vmem:[%s1788_s18 + $0x50] sm:$0xff] %v1169_v56  ;;  %v1172_v59 = vadd.f32 %v1171_v58, %v1170_v57 }
 0x2b0   : > { %908 = vst [vmem:[%s1788_s18 + $0x58] sm:$0xff] %v1172_v59 }
 0x2b2   : > { %v1173_v60 = vpop.f32.mrb[24].mxu1 }
 0x2b3   : > { %v1174_v61 = vpop.f32.mrb[25].mxu1 }
 0x2b4   : > { %v1175_v62 = vadd.f32 %v1174_v61, %v1173_v60  ;;  %v1176_v63 = vpop.f32.mrb[26].mxu1 }
 0x2b5   : > { %v1177_v0 = vpop.f32.mrb[27].mxu1 }
 0x2b6   : > { %909 = vst [vmem:[%s1788_s18 + $0x60] sm:$0xff] %v1175_v62  ;;  %v1178_v1 = vadd.f32 %v1177_v0, %v1176_v63 }
 0x2b8   : > { %910 = vst [vmem:[%s1788_s18 + $0x68] sm:$0xff] %v1178_v1 }
 0x2ba   : > { %v1179_v2 = vpop.f32.mrb[28].mxu1 }
 0x2bb   : > { %v1180_v3 = vpop.f32.mrb[29].mxu1 }
 0x2bc   : > { %v1181_v4 = vadd.f32 %v1180_v3, %v1179_v2  ;;  %v1182_v5 = vpop.f32.mrb[30].mxu1 }
 0x2bd   : > { %v1183_v6 = vpop.f32.mrb[31].mxu1 }
 0x2be   : > { %911 = vst [vmem:[%s1788_s18 + $0x70] sm:$0xff] %v1181_v4  ;;  %v1184_v7 = vadd.f32 %v1183_v6, %v1182_v5 }
 0x2c0   : > { %912 = vst [vmem:[%s1788_s18 + $0x78] sm:$0xff] %v1184_v7 }
 0x2c1   : > { %1469 = shalt.err (!%p1466_p2)
}
 0x2c2   : > { %s1470_s20 = scalar_lea.hbm %s1809_s8, 2048  ;;  %s1474_s7 = scalar_lea.hbm %s1867_s3, 4096 }
 0x2c3   : > { %p1471_p8 = scmp.ne.s32.totalorder %s1809_s8, %s1470_s20  ;;  %p1475_p6 = scmp.lt.u32.totalorder %s1809_s8, %s1867_s3 }
 0x2c4   : > { %p1476_p11 = scmp.lt.u32.totalorder %s1474_s7, %s1470_s20  ;;  %p1478_p4 = scmp.lt.u32.totalorder %s1470_s20, %s1809_s8 }
 0x2c5   : > { %p1472_p12 = pnand %p1471_p8, %p1887_p0 }
 0x2c6   : > { %p1477_p1 = por %p1476_p11, %p1475_p6 }
 0x2c7   : > { %p1473_p7 = pneg %p1472_p12 }
 0x2c8   : > { %p1479_p9 = por %p1478_p4, %p1477_p1 }
 0x2ca   : > { %p1480_p5 = pnand %p1479_p9, %p1473_p7 }
 0x2cc   : > { %1483 = shalt.err (!%p1480_p5)
}
 0x2cd   : > { %s1556_s9 = smov 128   ;;  %s1557_s18 = smov 8  }
 0x2ce   : > { %1243 = dma.vmem_to_hbm [thread:$0]  (%p1887_p0), %s1811_s24, 2048, %s1809_s8, %s1817_s15, %s1556_s9, %s1556_s9, %s1557_s18  }
 0x2cf PF: > { %s942_s21 = sand.u32 1, %s1526_s12   ;;  %p1888_p3 = scmp.ne.s32.totalorder %s1876_s23, 0 }
 0x2d0   : > { %p1889_p10 = scmp.ge.s32.totalorder %s1546_s17, 2  ;;  %s943_s29 = scalar_lea.sflag [#allocation5], %s942_s21 }
 0x2d2   : > { %p1257_p13 = pnand %p1889_p10, %p1888_p3 }
 0x2d4   : > { %1521 = dma.done.wait (!%p1257_p13), %s943_s29, 2048  }
 0x2d5   : > { %1523 = vsyncadd (!%p1257_p13), %s943_s29, 4294965248  ;;  %s20_s17 = sadd.s32 1, %s1546_s17   ;;  %s1890_s12 = smov %s1530_s13 }
 0x2d6   : > { %p17_p2 = scmp.ge.s32.totalorder %s20_s17, 4   ;;  %s1891_s13 = smov %s1534_s14 }
 0x2d7   : > { %s1892_s14 = smov %s1718_s26  ;;  %s1893_s15 = smov %s1542_s16 }
 0x2d8   : > { %s1894_s16 = smov %s1896_s30  ;;  %19 = sbr.rel (!%p17_p2) target bundleno = 7 (0x7), region = 95 }
 0x2df   :  { %948 = vsyncpa [#allocation4], 1 }
 0x2e0   :  { %950 = vsyncpa [#allocation4 + $0x1], 1 }
 0x2e1   :  { %951 = vsyncpa [#allocation7], 1 }
 0x2e2   :  { %953 = vsyncpa [#allocation7 + $0x1], 1 }
 0x2e3   :  { %954 = vsyncpa [#allocation5], 1 }
 0x2e4   :  { %956 = vsyncpa [#allocation5 + $0x1], 1 }

</bundles_post_ra>
